<compile_context>
chip_gen: v6e
topology: v6e:2x2x1
jax: 0.10.0
libtpu: 0.0.40
codegen_flags: <defaults>
</compile_context>

<pallas_src>
import numpy as np
import jax
import jax.numpy as jnp
from jax.experimental import pallas as pl
from jax.experimental.pallas import tpu as pltpu

_EPS = 1e-4                               # added to std (not var), as in PyTorch
_DEF_BLOCK_BUDGET = 16 * 1024 * 1024      # target per-block VMEM footprint
_DEF_VMEM_LIMIT = 32 * 1024 * 1024        # scoped VMEM limit handed to Mosaic


def _round_up(a, m):
    return ((a + m - 1) // m) * m


# ---------------------------------------------------------------------------
# transposed=False (module default): x is (B, L, D); per-(b, d) stats over L.
# L sits on the sublane axis, D on the lane axis -> no host-side transpose.
# ---------------------------------------------------------------------------
def _revin_channels_last_kernel(x_ref, y_ref, m_ref, s_ref):
    x = x_ref[0].astype(jnp.float32)                        # (L, tD)
    L = x.shape[0]
    inv_l = jnp.float32(1.0 / L)
    ones = jnp.ones((1, L), dtype=jnp.float32)
    # Length reductions on the MXU (free slot): sum(x) and sum(x*x) per lane.
    sum_x = jnp.dot(ones, x, preferred_element_type=jnp.float32)        # (1, tD)
    sum_xx = jnp.dot(ones, x * x, preferred_element_type=jnp.float32)   # (1, tD)
    mean = sum_x * inv_l
    var = jnp.maximum(sum_xx * inv_l - mean * mean, 0.0)
    std = jnp.sqrt(var) + jnp.float32(_EPS)
    inv_std = 1.0 / std                                     # tiny (1, tD) vector
    y_ref[0] = ((x - mean) * inv_std).astype(y_ref.dtype)
    m_ref[0] = mean
    s_ref[0] = std


def _choose_lane_tile(D, L, x_bytes, y_bytes, n_batch, budget):
    # Per lane-column cost of one block: double-buffered input + output plus
    # ~2 tile-sized f32 temporaries materialized by the body.
    per_lane = L * (2 * x_bytes + 2 * y_bytes + 2 * 4)
    max_lanes = max(128, ((budget // max(per_lane, 1)) // 128) * 128)
    # Aim for >= 4 total grid steps so both v7x TensorCores stay busy.
    want_tiles = max(1, -(-4 // max(1, n_batch)))
    want_lanes = _round_up(-(-D // want_tiles), 128)
    t_d = min(max_lanes, want_lanes)
    if t_d >= D:
        return D                    # full-D block (always layout-legal)
    return t_d                      # multiple of 128; ragged tail is fine


def _revin_channels_last(x3, block_budget, vmem_limit):
    B, L, D = x3.shape
    isz = x3.dtype.itemsize
    t_d = _choose_lane_tile(D, L, isz, isz, B, block_budget)
    # TODO(synk): for extremely long L (a full-L, 128-lane f32 column exceeding
    # the VMEM budget) add a split-L accumulation pass; full L is resident here.
    grid = (B, pl.cdiv(D, t_d))
    return pl.pallas_call(
        _revin_channels_last_kernel,
        out_shape=(
            jax.ShapeDtypeStruct((B, L, D), x3.dtype),
            jax.ShapeDtypeStruct((B, 1, D), jnp.float32),
            jax.ShapeDtypeStruct((B, 1, D), jnp.float32),
        ),
        grid=grid,
        in_specs=[pl.BlockSpec((1, L, t_d), lambda b, d: (b, 0, d))],
        out_specs=(
            pl.BlockSpec((1, L, t_d), lambda b, d: (b, 0, d)),
            pl.BlockSpec((1, 1, t_d), lambda b, d: (b, 0, d)),
            pl.BlockSpec((1, 1, t_d), lambda b, d: (b, 0, d)),
        ),
        compiler_params=pltpu.CompilerParams(
            dimension_semantics=("parallel", "parallel"),
            vmem_limit_bytes=vmem_limit),
    )(x3)


# ---------------------------------------------------------------------------
# transposed=True: x is (..., D, L); every (batch, channel) is a row of an
# (R, L) slab, reduction runs over the lane axis.
# ---------------------------------------------------------------------------
def _revin_rows_kernel(x_ref, y_ref, m_ref, s_ref):
    x = x_ref[...].astype(jnp.float32)                      # (tr, L)
    inv_l = jnp.float32(1.0 / x.shape[-1])
    sum_x = jnp.sum(x, axis=-1, keepdims=True)              # (tr, 1)
    sum_xx = jnp.sum(x * x, axis=-1, keepdims=True)         # (tr, 1)
    mean = sum_x * inv_l
    var = jnp.maximum(sum_xx * inv_l - mean * mean, 0.0)
    std = jnp.sqrt(var) + jnp.float32(_EPS)
    inv_std = 1.0 / std                                     # per-row column
    y_ref[...] = ((x - mean) * inv_std).astype(y_ref.dtype)
    m_ref[...] = mean
    s_ref[...] = std


def _choose_row_tile(R, L, x_bytes, budget):
    sub = max(8, 8 * (4 // max(1, x_bytes)))    # 8 f32 / 16 bf16 / 32 int8
    per_row = L * (4 * x_bytes + 2 * 4)         # 2x in + 2x out + f32 temps
    budget_rows = max(sub, ((budget // max(per_row, 1)) // sub) * sub)
    want_rows = _round_up(-(-R // 4), sub)      # >= 4 grid steps when possible
    t_r = min(budget_rows, want_rows)
    if t_r >= R:
        return R                                # single full-R block
    return t_r


def _revin_transposed(x2, block_budget, vmem_limit):
    R, L = x2.shape
    t_r = _choose_row_tile(R, L, x2.dtype.itemsize, block_budget)
    grid = (pl.cdiv(R, t_r),)
    return pl.pallas_call(
        _revin_rows_kernel,
        out_shape=(
            jax.ShapeDtypeStruct((R, L), x2.dtype),
            jax.ShapeDtypeStruct((R, 1), jnp.float32),
            jax.ShapeDtypeStruct((R, 1), jnp.float32),
        ),
        grid=grid,
        in_specs=[pl.BlockSpec((t_r, L), lambda i: (i, 0))],
        out_specs=(
            pl.BlockSpec((t_r, L), lambda i: (i, 0)),
            pl.BlockSpec((t_r, 1), lambda i: (i, 0)),
            pl.BlockSpec((t_r, 1), lambda i: (i, 0)),
        ),
        compiler_params=pltpu.CompilerParams(
            dimension_semantics=("parallel",),
            vmem_limit_bytes=vmem_limit),
    )(x2)


def reversible_instance_norm_1d_input(x, *, transposed=False,
                                      block_budget_bytes=_DEF_BLOCK_BUDGET,
                                      vmem_limit_bytes=_DEF_VMEM_LIMIT):
    """Pallas forward of ReversibleInstanceNorm1dInput.

    Returns (y, m, s):
      y: normalized tensor, same layout / dtype as x.
      m, s: float32 per-(batch, channel) mean / (std + 1e-4) in the transposed
            layout with a trailing singleton dim -- the statistics the PyTorch
            module stashes as self.m / self.s for the reversible output stage.
    """
    if x.ndim < 2:
        raise ValueError("expected an input with at least 2 dims")

    if not transposed:
        # Native (..., L, D) layout; reduce over L in-kernel (no transposes of
        # the big tensor; only the tiny stats are relaid out afterwards).
        lead = x.shape[:-2]
        L, D = x.shape[-2], x.shape[-1]
        B = int(np.prod(lead)) if lead else 1
        x3 = x.reshape(B, L, D)
        y3, m3, s3 = _revin_channels_last(x3, block_budget_bytes, vmem_limit_bytes)
        y = y3.reshape(x.shape)
        m = jnp.swapaxes(m3, -1, -2).reshape(lead + (D, 1))   # (B*D)-sized, cheap
        s = jnp.swapaxes(s3, -1, -2).reshape(lead + (D, 1))
        return y, m, s

    # transposed=True: (..., D, L); flatten leading dims into rows.
    lead = x.shape[:-1]
    L = x.shape[-1]
    R = int(np.prod(lead)) if lead else 1
    x2 = x.reshape(R, L)
    y2, m2, s2 = _revin_transposed(x2, block_budget_bytes, vmem_limit_bytes)
    y = y2.reshape(x.shape)
    m = m2.reshape(lead + (1,))
    s = s2.reshape(lead + (1,))
    return y, m, s


if __name__ == "__main__":
    key_a, key_b = jax.random.split(jax.random.PRNGKey(0))

    # --- transposed=False (module default): input layout (batch, length, d) ---
    B, L, D = 2, 64, 256
    x = jax.random.normal(key_a, (B, L, D), dtype=jnp.float32)
    y, m, s = reversible_instance_norm_1d_input(x, transposed=False)
    jax.block_until_ready((y, m, s))

    xt = np.swapaxes(np.asarray(x), -1, -2)                  # (B, D, L)
    m_ref = xt.mean(axis=-1, keepdims=True)
    s_ref = xt.std(axis=-1, keepdims=True) + _EPS            # population std
    y_ref = np.swapaxes((xt - m_ref) / s_ref, -1, -2)        # back to (B, L, D)
    np.testing.assert_allclose(np.asarray(y), y_ref, rtol=1e-5, atol=1e-5)
    np.testing.assert_allclose(np.asarray(m), m_ref, rtol=1e-5, atol=1e-5)
    np.testing.assert_allclose(np.asarray(s), s_ref, rtol=1e-5, atol=1e-5)

    # --- transposed=True: input layout (batch, d, length) ---
    B2, D2, L2 = 2, 16, 64
    x2 = jax.random.normal(key_b, (B2, D2, L2), dtype=jnp.float32)
    y2, m2, s2 = reversible_instance_norm_1d_input(x2, transposed=True)
    jax.block_until_ready((y2, m2, s2))

    x2n = np.asarray(x2)
    m2_ref = x2n.mean(axis=-1, keepdims=True)
    s2_ref = x2n.std(axis=-1, keepdims=True) + _EPS
    np.testing.assert_allclose(np.asarray(y2), (x2n - m2_ref) / s2_ref,
                               rtol=1e-5, atol=1e-5)
    np.testing.assert_allclose(np.asarray(m2), m2_ref, rtol=1e-5, atol=1e-5)
    np.testing.assert_allclose(np.asarray(s2), s2_ref, rtol=1e-5, atol=1e-5)

    print("KERNEL_OK")
</pallas_src>

<mosaic_0001>
module attributes {stable_mosaic.version = 11 : i64} {
  func.func @_revin_channels_last_kernel(%arg0: i32, %arg1: i32, %arg2: memref<1x64x128xf32, #tpu.memory_space<vmem>>, %arg3: memref<1x64x128xf32, #tpu.memory_space<vmem>>, %arg4: memref<1x1x128xf32, #tpu.memory_space<vmem>>, %arg5: memref<1x1x128xf32, #tpu.memory_space<vmem>>) attributes {dimension_semantics = [#tpu.dimension_semantics<parallel>, #tpu.dimension_semantics<parallel>], iteration_bounds = array<i64: 2, 2>, scalar_prefetch = 0 : i64, scratch_operands = 0 : i64, tpu.core_type = #tpu.core_type<tc>, window_params = [{transform_indices = @transform_0, window_bounds = array<i64: 1, 64, 128>}, {transform_indices = @transform_1, window_bounds = array<i64: 1, 64, 128>}, {transform_indices = @transform_2, window_bounds = array<i64: 1, 1, 128>}, {transform_indices = @transform_3, window_bounds = array<i64: 1, 1, 128>}]} {
    %c0 = arith.constant 0 : index
    %c0_0 = arith.constant 0 : index
    %c0_1 = arith.constant 0 : index
    %0 = vector.load %arg2[%c0, %c0_0, %c0_1] : memref<1x64x128xf32, #tpu.memory_space<vmem>>, vector<1x64x128xf32>
    %1 = vector.shape_cast %0 : vector<1x64x128xf32> to vector<64x128xf32>
    %cst = arith.constant 1.000000e+00 : f32
    %2 = vector.broadcast %cst : f32 to vector<1x64xf32>
    %cst_2 = arith.constant dense<0.000000e+00> : vector<1x128xf32>
    %3 = tpu.matmul %2, %1, %cst_2 {dimension_numbers = #tpu.dot_dimension_numbers<[1], [0], [0], [1], [0, 0, 1, 1], [], []>} : vector<1x64xf32>, vector<64x128xf32>, vector<1x128xf32> -> vector<1x128xf32>
    %4 = arith.mulf %1, %1 : vector<64x128xf32>
    %cst_3 = arith.constant dense<0.000000e+00> : vector<1x128xf32>
    %5 = tpu.matmul %2, %4, %cst_3 {dimension_numbers = #tpu.dot_dimension_numbers<[1], [0], [0], [1], [0, 0, 1, 1], [], []>} : vector<1x64xf32>, vector<64x128xf32>, vector<1x128xf32> -> vector<1x128xf32>
    %cst_4 = arith.constant 1.562500e-02 : f32
    %6 = vector.broadcast %cst_4 : f32 to vector<1x128xf32>
    %7 = arith.mulf %3, %6 : vector<1x128xf32>
    %cst_5 = arith.constant 1.562500e-02 : f32
    %8 = vector.broadcast %cst_5 : f32 to vector<1x128xf32>
    %9 = arith.mulf %5, %8 : vector<1x128xf32>
    %10 = arith.mulf %7, %7 : vector<1x128xf32>
    %11 = arith.subf %9, %10 : vector<1x128xf32>
    %cst_6 = arith.constant 0.000000e+00 : f32
    %12 = vector.broadcast %cst_6 : f32 to vector<1x128xf32>
    %13 = arith.maximumf %11, %12 : vector<1x128xf32>
    %14 = math.sqrt %13 : vector<1x128xf32>
    %cst_7 = arith.constant 9.99999974E-5 : f32
    %15 = vector.broadcast %cst_7 : f32 to vector<1x128xf32>
    %16 = arith.addf %14, %15 : vector<1x128xf32>
    %cst_8 = arith.constant 1.000000e+00 : f32
    %17 = vector.broadcast %cst_8 : f32 to vector<1x128xf32>
    %18 = arith.divf %17, %16 : vector<1x128xf32>
    %19 = vector.broadcast %7 : vector<1x128xf32> to vector<64x128xf32>
    %20 = arith.subf %1, %19 : vector<64x128xf32>
    %21 = vector.broadcast %18 : vector<1x128xf32> to vector<64x128xf32>
    %22 = arith.mulf %20, %21 : vector<64x128xf32>
    %c0_9 = arith.constant 0 : index
    %c0_10 = arith.constant 0 : index
    %c0_11 = arith.constant 0 : index
    %23 = vector.load %arg3[%c0_9, %c0_10, %c0_11] : memref<1x64x128xf32, #tpu.memory_space<vmem>>, vector<1x64x128xf32>
    %24 = vector.shape_cast %23 : vector<1x64x128xf32> to vector<64x128xf32>
    %25 = vector.shape_cast %22 : vector<64x128xf32> to vector<1x64x128xf32>
    tpu.vector_store %arg3[%c0_9, %c0_10, %c0_11], %25 {strides = array<i32>} : memref<1x64x128xf32, #tpu.memory_space<vmem>>, vector<1x64x128xf32>,
    %c0_12 = arith.constant 0 : index
    %c0_13 = arith.constant 0 : index
    %c0_14 = arith.constant 0 : index
    %26 = vector.load %arg4[%c0_12, %c0_13, %c0_14] : memref<1x1x128xf32, #tpu.memory_space<vmem>>, vector<1x1x128xf32>
    %27 = vector.shape_cast %26 : vector<1x1x128xf32> to vector<1x128xf32>
    %28 = vector.shape_cast %7 : vector<1x128xf32> to vector<1x1x128xf32>
    tpu.vector_store %arg4[%c0_12, %c0_13, %c0_14], %28 {strides = array<i32>} : memref<1x1x128xf32, #tpu.memory_space<vmem>>, vector<1x1x128xf32>,
    %c0_15 = arith.constant 0 : index
    %c0_16 = arith.constant 0 : index
    %c0_17 = arith.constant 0 : index
    %29 = vector.load %arg5[%c0_15, %c0_16, %c0_17] : memref<1x1x128xf32, #tpu.memory_space<vmem>>, vector<1x1x128xf32>
    %30 = vector.shape_cast %29 : vector<1x1x128xf32> to vector<1x128xf32>
    %31 = vector.shape_cast %16 : vector<1x128xf32> to vector<1x1x128xf32>
    tpu.vector_store %arg5[%c0_15, %c0_16, %c0_17], %31 {strides = array<i32>} : memref<1x1x128xf32, #tpu.memory_space<vmem>>, vector<1x1x128xf32>,
    return
  }
  func.func @transform_0(%arg0: i32, %arg1: i32) -> (i32, i32, i32) {
    %c0_i32 = arith.constant 0 : i32
    %c0_i32_0 = arith.constant 0 : i32
    return %arg0, %c0_i32, %arg1 : i32, i32, i32
  }
  func.func @transform_1(%arg0: i32, %arg1: i32) -> (i32, i32, i32) {
    %c0_i32 = arith.constant 0 : i32
    %c0_i32_0 = arith.constant 0 : i32
    return %arg0, %c0_i32, %arg1 : i32, i32, i32
  }
  func.func @transform_2(%arg0: i32, %arg1: i32) -> (i32, i32, i32) {
    %c0_i32 = arith.constant 0 : i32
    %c0_i32_0 = arith.constant 0 : i32
    return %arg0, %c0_i32, %arg1 : i32, i32, i32
  }
  func.func @transform_3(%arg0: i32, %arg1: i32) -> (i32, i32, i32) {
    %c0_i32 = arith.constant 0 : i32
    %c0_i32_0 = arith.constant 0 : i32
    return %arg0, %c0_i32, %arg1 : i32, i32, i32
  }
}

</mosaic_0001>

<bundles_post_ra>
// kernel: tpu_custom_call.1
= control target key start
LH: loop header
LB: loop body
LE: loop exit
PB: predicated region body
PF: predicated region fallthrough
CT: control target
= control target key end

     0   :  { %9 = vsyncpa [#allocation3], 0  ;;  %s1332_s0 = inlined_call_operand.hbm [shape: f32[2,64,256], index: 0, kind: input, shape index: {}]   ;;  %s1333_s1 = inlined_call_operand.hbm [shape: f32[2,64,256], index: 1, kind: output, shape index: {0}]   ;;  %s1334_s2 = inlined_call_operand.hbm [shape: f32[2,1,256], index: 2, kind: output, shape index: {1}]   ;;  %s1335_s3 = inlined_call_operand.hbm [shape: f32[2,1,256], index: 3, kind: output, shape index: {2}]  }
   0x1   :  { %11 = vsyncpa [#allocation3 + $0x1], 0 }
   0x2   :  { %12 = vsyncpa [#allocation4], 0 }
   0x3   :  { %14 = vsyncpa [#allocation4 + $0x1], 0 }
   0x4   :  { %15 = vsyncpa [#allocation7], 0 }
   0x5   :  { %17 = vsyncpa [#allocation7 + $0x1], 0  ;;  %s1026_s12 = smov 0   ;;  %s1028_s13 = smov 0  }
   0x6   :  { %s1030_s14 = smov 0   ;;  %s1032_s15 = smov 0  }
   0x7   :  { %s1034_s16 = smov 0   ;;  %s1036_s17 = smov 0  }
   0x8   :  { %s1038_s18 = smov 0   ;;  %s1040_s19 = smov 0  }
   0x9 LB: > { %1339 = sst [smem:[#allocation12_spill]] %s963_s12  ;;  %s1067_s20 = sadd.s32 4294967295, %s991_s19   ;;  %s991_s19 = sphi %s1040_s19, %s23_s19   ;;  %s987_s18 = sphi %s1038_s18, %s1356_s18   ;;  %s983_s17 = sphi %s1036_s17, %s1355_s17   ;;  %s979_s16 = sphi %s1034_s16, %s1354_s16   ;;  %s975_s15 = sphi %s1032_s15, %s1353_s15   ;;  %s971_s14 = sphi %s1030_s14, %s1352_s14   ;;  %s967_s13 = sphi %s1028_s13, %s1351_s13   ;;  %s963_s12 = sphi %s1026_s12, %s1350_s12  }
   0xa   : > { %s634_s21 = sadd.s32 4294967294, %s991_s19   ;;  %s32_s22 = sadd.s32 1, %s983_s17 }
   0xb   : > { %s35_s23 = sadd.s32 1, %s987_s18  ;;  %p33_p0 = scmp.ge.s32.totalorder %s32_s22, 2 }
   0xc   : > { %s44_s24 = sadd.s32 1, %s971_s14  ;;  %p51_p1 = scmp.ne.s32.totalorder %s971_s14, %s967_s13 }
   0xd   : > { %p52_p2 = scmp.eq.s32.totalorder %s991_s19, 0  ;;  %s1358_s22 = smov (%p33_p0, %s32_s22), 0 }
   0xe   : > { %1340 = sst [smem:[#allocation13_spill]] %s1358_s22  ;;  %s1360_s23 = smov (!%p33_p0, %s35_s23), %s987_s18 }
   0xf   : > { %s40_s25 = ssub.s32 %s983_s17, %s1358_s22  ;;  %p1081_p3 = por %p52_p2, %p51_p1 }
  0x10   : > { %p37_p4 = scmp.ge.s32.totalorder %s1360_s23, 2  ;;  %p57_p5 = scmp.ne.s32.totalorder %s967_s13, %s963_s12 }
  0x11   : > { %p58_p6 = scmp.eq.s32.totalorder %s1067_s20, 0  ;;  %p83_p7 = scmp.eq.s32.totalorder %s1067_s20, 3 }
  0x12   : > { %s1362_s23 = smov (%p37_p4, %s1360_s23), 0  ;;  %p89_p10 = scmp.eq.s32.totalorder %s634_s21, 3 }
  0x13   : > { %1342 = sst [smem:[#allocation14_spill]] %s1362_s23  ;;  %p1091_p8 = por %p58_p6, %p57_p5 }
  0x14   : > { %p1095_p9 = por %p83_p7, %p51_p1  ;;  %s39_s29 = ssub.s32 %s987_s18, %s1362_s23 }
  0x15   : > { %s41_s30 = sor.u32 %s40_s25, %s39_s29  ;;  %p1103_p12 = por %p89_p10, %p57_p5 }
  0x16   : > { %p42_p11 = scmp.eq.s32.totalorder %s41_s30, 0  ;;  %p732_p13 = scmp.lt.s32.totalorder %s991_s19, 4 }
  0x17   : > { %s165_s5 = sand.u32 1, %s971_s14   ;;  %s638_s8 = sshll.u32 %s987_s18, 4 }
  0x18   : > { %s1110_s6 = scalar_select %p42_p11, %s971_s14, %s44_s24  }
  0x19   : > { %s637_s7 = sshll.u32 %s165_s5, 6  ;;  %s174_s9 = sadd.s32 %s983_s17, %s638_s8 }
  0x1a   : > { %s169_s10 = scalar_lea.vmem [#allocation2], %s637_s7  ;;  %s639_s22 = sshll.u32 %s174_s9, 7 }
  0x1b   : > { %s177_s11 = sshll.u32 %s169_s10, 4  ;;  %s176_s25 = scalar_lea.hbm %s1332_s0, %s639_s22  ;;  %s178_s11 = int_to_ptr.vmem [resolvable:$true] %s177_s11 }
  0x1c   : > { %p1119_p0 = pnand %p732_p13, %p1081_p3  ;;  %s166_s30 = scalar_lea.sflag [#allocation3], %s165_s5 }
  0x1d   : > { %s824_s24 = scalar_lea.vmem %s178_s11, 1024  ;;  %s993_s7 = smov [#allocation2]  }
  0x1e   : > { %p813_p1 = pneg %p1119_p0  ;;  %p825_p2 = scmp.ne.s32.totalorder %s178_s11, %s824_s24 }
  0x1f   : > { %s829_s8 = sshll.u32 %s993_s7, 4  ;;  %s830_s8 = int_to_ptr.vmem [resolvable:$false] %s829_s8 }
  0x20   : > { %p827_p4 = pnand %p825_p2, %p813_p1  ;;  %s831_s9 = scalar_lea.vmem %s830_s8, 2048 }
  0x21   : > { %p832_p6 = scmp.lt.s32.totalorder %s178_s11, %s830_s8  ;;  %p833_p7 = scmp.lt.s32.totalorder %s831_s9, %s824_s24 }
  0x22   : > { %p828_p5 = pneg %p827_p4 }
  0x23   : > { %p834_p10 = por %p833_p7, %p832_p6 }
  0x25   : > { %p835_p11 = pnand %p834_p10, %p828_p5 }
  0x27   : > { %838 = shalt.err (!%p835_p11)
}
  0x28   : > { %s994_s12 = smov 256   ;;  %s995_s22 = smov 128  }
  0x29   : > { %s996_s23 = smov 8   ;;  %p640_p3 = scmp.ge.s32.totalorder %s991_s19, 1 }
  0x2a   : > { %721 = dma.hbm_to_vmem [thread:$0]  (!%p1119_p0), %s176_s25, 1024, %s178_s11, %s166_s30, %s994_s12, %s995_s22, %s996_s23  }
  0x2b   : > { %p185_p13 = scmp.lt.s32.totalorder %s991_s19, 5 }
  0x2d   : > { %p186_p1 = pnand %p640_p3, %p185_p13 }
  0x2e   : > { %s1130_s26 = sand.u32 (!%p186_p1), 1, %s967_s13  }
  0x2f   : > { %189 = sbr.rel (%p186_p1) target bundleno = 342 (0x156), region = 24  ;;  %s641_s5 = sshll.u32 (!%p186_p1), %s1130_s26, 6 }
  0x30   : > { %s192_s10 = scalar_lea.sflag (!%p186_p1), [#allocation3], %s1130_s26  ;;  %s1136_s24 = scalar_lea.vmem (!%p186_p1), [#allocation2], %s641_s5 }
  0x34   : > { %950 = dma.done.wait (%p1091_p8), %s192_s10, 1024  }
  0x35   : > { %952 = vsyncadd (%p1091_p8), %s192_s10, 4294966272  ;;  %v997_v0 = vmov 0.0   ;;  %vm998_vm0 = vmmov 0   ;;  %v1143_v1 = vld [vmem:[%s1136_s24 + $0x38] sm:$0xff]  ;;  %v1146_v2 = vld [vmem:[%s1136_s24 + $0x30] sm:$0xff]  ;;  %vm234_vm1 = vcmask 523264  }
  0x36   : > { %672 = vmatprep.subr.mxu0 %v997_v0  ;;  %691 = vmatprep.subr.mxu1 %v997_v0  ;;  %v1149_v3 = vld [vmem:[%s1136_s24 + $0x28] sm:$0xff]  ;;  %v315_v4 = vmul.f32 %v1143_v1, %v1143_v1  ;;  %v314_v5 = vmul.f32 %v1146_v2, %v1146_v2  ;;  %v1157_v6 = vld [vmem:[%s1136_s24 + $0x20] sm:$0xff]  ;;  %v1163_v8 = vld [vmem:[%s1136_s24 + $0x18] sm:$0xff]  ;;  %v999_v17 = vmov 1.0   ;;  %s648_s27 = sshll.u32 %s979_s16, 1  ;;  %s440_s25 = sand.u32 1, %s1067_s20  }
  0x37   : > { %688 = vmatprep.mubr.msk.f32.mxu0 %vm998_vm0, %v997_v0  ;;  %707 = vmatprep.mubr.msk.f32.mxu1 %vm998_vm0, %v997_v0  ;;  %v313_v7 = vmul.f32 %v1149_v3, %v1149_v3  ;;  %v312_v9 = vmul.f32 %v1157_v6, %v1157_v6  ;;  %v1169_v10 = vld [vmem:[%s1136_s24 + $0x10] sm:$0xff]  ;;  %v311_v11 = vmul.f32 %v1163_v8, %v1163_v8  ;;  %v1175_v12 = vld [vmem:[%s1136_s24 + $0x8] sm:$0xff]  ;;  %v1181_v14 = vld [vmem:[%s1136_s24] sm:$0xff]  ;;  %s1192_s11 = sadd.s32 %s975_s15, %s648_s27  ;;  %s219_s30 = scalar_lea.vmem [#allocation6], %s1130_s26 }
  0x38   : > { %673 = vmatpush3.msra.mxu0 %v1143_v1  ;;  %692 = vmatpush3.msra.mxu1 %v315_v4  ;;  %v310_v13 = vmul.f32 %v1169_v10, %v1169_v10  ;;  %v309_v15 = vmul.f32 %v1175_v12, %v1175_v12  ;;  %v308_v16 = vmul.f32 %v1181_v14, %v1181_v14  ;;  %s649_s29 = sshll.u32 %s1192_s11, 4  ;;  %s476_s7 = sshll.u32 %s219_s30, 4  ;;  %s1206_s7 = int_to_ptr.vmem [resolvable:$true] %s476_s7 }
  0x39   : > { %674 = vmatprep.subr.mxu0 %v997_v0  ;;  %693 = vmatprep.subr.mxu1 %v997_v0  ;;  %s1204_s12 = scalar_lea.hbm %s1334_s2, %s649_s29  ;;  %s1211_s20 = scalar_lea.sflag [#allocation7], %s440_s25 }
  0x3a   : > { %675 = vmatpush3.msra.mxu0 %v1146_v2  ;;  %694 = vmatpush3.msra.mxu1 %v314_v5  ;;  %s839_s22 = scalar_lea.vmem %s1206_s7, 16  ;;  %s1000_s23 = smov [#allocation6]  }
  0x3b   : > { %676 = vmatprep.subr.mxu0 %v997_v0  ;;  %695 = vmatprep.subr.mxu1 %v997_v0  ;;  %p840_p8 = scmp.ne.s32.totalorder %s1206_s7, %s839_s22  ;;  %s843_s10 = sshll.u32 %s1000_s23, 4  ;;  %s844_s10 = int_to_ptr.vmem [resolvable:$false] %s843_s10 }
  0x3c   : > { %677 = vmatpush3.msra.mxu0 %v1149_v3  ;;  %696 = vmatpush3.msra.mxu1 %v313_v7  ;;  %s845_s24 = scalar_lea.vmem %s844_s10, 32  ;;  %p846_p4 = scmp.lt.s32.totalorder %s1206_s7, %s844_s10 }
  0x3d   : > { %678 = vmatprep.subr.mxu0 %v997_v0  ;;  %697 = vmatprep.subr.mxu1 %v997_v0  ;;  %p841_p0 = pnand %p840_p8, %p1095_p9  ;;  %p847_p5 = scmp.lt.s32.totalorder %s845_s24, %s839_s22 }
  0x3e   : > { %679 = vmatpush3.msra.mxu0 %v1157_v6  ;;  %698 = vmatpush3.msra.mxu1 %v312_v9 }
  0x3f   : > { %680 = vmatprep.subr.mxu0 %v997_v0  ;;  %699 = vmatprep.subr.mxu1 %v997_v0  ;;  %p842_p2 = pneg %p841_p0  ;;  %p848_p6 = por %p847_p5, %p846_p4 }
  0x40   : > { %681 = vmatpush3.msra.mxu0 %v1163_v8  ;;  %700 = vmatpush3.msra.mxu1 %v311_v11 }
  0x41   : > { %682 = vmatprep.subr.mxu0 %v997_v0  ;;  %701 = vmatprep.subr.mxu1 %v997_v0  ;;  %p849_p7 = pnand %p848_p6, %p842_p2 }
  0x42   : > { %683 = vmatpush3.msra.mxu0 %v1169_v10  ;;  %702 = vmatpush3.msra.mxu1 %v310_v13 }
  0x43   : > { %684 = vmatprep.subr.mxu0 %v997_v0  ;;  %703 = vmatprep.subr.mxu1 %v997_v0 }
  0x44   : > { %685 = vmatpush3.msra.mxu0 %v1175_v12  ;;  %704 = vmatpush3.msra.mxu1 %v309_v15 }
  0x45   : > { %686 = vmatprep.subr.mxu0 %v997_v0  ;;  %705 = vmatprep.subr.mxu1 %v997_v0 }
  0x46   : > { %687 = vmatpush3.msra.mxu0 %v1181_v14  ;;  %706 = vmatpush3.msra.mxu1 %v308_v16 }
  0x47   : > { %689 = vmatmul.mubr.msk.f32.vlgmr.msra.gmra.mxu0 %vm234_vm1, %v999_v17  ;;  %708 = vmatmul.mubr.msk.f32.vlgmr.msra.gmra.mxu1 %vm234_vm1, %v999_v17 }
 0x107   : > { %v304_v18 = vpop.f32.mrf.mxu0  ;;  %v382_v21 = vpop.f32.mrf.mxu1 }
 0x108   : > { %v1197_v19 = vmul.f32 0.015625, %v304_v18  ;;  %v387_v22 = vmul.f32 0.015625, %v382_v21 }
 0x109   : > { %v690_v20 = vpop.f32.mrf.mxu0  ;;  %v709_v24 = vpop.f32.mrf.mxu1 }
 0x10a   : > { %433 = vst [vmem:[%s219_s30] sm:$0x1] %v1197_v19  ;;  %v388_v23 = vmul.f32 %v1197_v19, %v1197_v19 }
 0x10b   : > { %852 = shalt.err (!%p849_p7)
}
 0x10c   : > { %s853_s27 = scalar_lea.hbm %s1204_s12, 16  ;;  %s857_s8 = scalar_lea.hbm %s1334_s2, 64 }
 0x10d   : > { %p854_p10 = scmp.ne.s32.totalorder %s1204_s12, %s853_s27  ;;  %p858_p13 = scmp.lt.s32.totalorder %s1204_s12, %s1334_s2 }
 0x10e   : > { %p859_p1 = scmp.lt.s32.totalorder %s857_s8, %s853_s27 }
 0x10f   : > { %p855_p11 = pnand %p854_p10, %p1095_p9 }
 0x110   : > { %p860_p8 = por %p859_p1, %p858_p13 }
 0x111   : > { %p856_p3 = pneg %p855_p11 }
 0x113   : > { %p861_p0 = pnand %p860_p8, %p856_p3 }
 0x115   : > { %864 = shalt.err (!%p861_p0)
}
 0x116   : > { %713 = dma.vmem_to_hbm [thread:$0]  (%p1095_p9), %s1206_s7, 16, %s1204_s12, %s1211_s20   ;;  %v389_v25 = vsub.f32 %v387_v22, %v388_v23  ;;  %v401_v31 = vlaneseq }
 0x117   : > { %s225_s22 = scalar_lea.vmem [#allocation8], %s1130_s26  ;;  %s1240_s7 = scalar_lea.hbm %s1335_s3, %s649_s29 }
 0x118   : > { %v390_v26 = vmax.f32 %v389_v25, 0.0  ;;  %s491_s10 = sshll.u32 %s225_s22, 4  ;;  %v402_v34 = vshrl.u32 %v401_v31, 7  ;;  %s1001_s25 = smov [#allocation8]   ;;  %s492_s10 = int_to_ptr.vmem [resolvable:$true] %s491_s10 }
 0x119   : > { %s865_s12 = scalar_lea.vmem %s492_s10, 16  ;;  %s869_s30 = sshll.u32 %s1001_s25, 4  ;;  %s870_s30 = int_to_ptr.vmem [resolvable:$false] %s869_s30 }
 0x11a   : > { %807 = vrsqrt.f32 %v390_v26  ;;  %vm393_vm2 = vcmp.eq.f32.partialorder %v390_v26, inf  ;;  %v396_v29 = vand.u32 2147483648, %v390_v26  ;;  %vm395_vm3 = vcmp.eq.f32.partialorder %v390_v26, 0.0  ;;  %p866_p2 = scmp.ne.s32.totalorder %s492_s10, %s865_s12  ;;  %s871_s8 = scalar_lea.vmem %s870_s30, 32 }
 0x11b   : > { %p872_p6 = scmp.lt.s32.totalorder %s492_s10, %s870_s30  ;;  %p873_p7 = scmp.lt.s32.totalorder %s871_s8, %s865_s12 }
 0x11c   : > { %p867_p4 = pnand %p866_p2, %p1095_p9 }
 0x11d   : > { %p874_p10 = por %p873_p7, %p872_p6 }
 0x11e   : > { %p868_p5 = pneg %p867_p4 }
 0x120   : > { %p875_p11 = pnand %p874_p10, %p868_p5 }
 0x127   : > { %v808_v27 = vpop.eup %807 }
 0x128   : > { %v392_v28 = vmul.f32 %v808_v27, %v390_v26 }
 0x12a   : > { %v394_v30 = vsel %vm393_vm2, %v390_v26, %v392_v28 }
 0x12b   : > { %v397_v32 = vsel %vm395_vm3, %v396_v29, %v394_v30 }
 0x12c   : > { %v398_v33 = vadd.f32 0.0001, %v397_v32 }
 0x12e   : > { %809 = vrcp.f32 %v398_v33  ;;  %434 = vst [vmem:[%s225_s22] sm:$0x1] %v398_v33 }
 0x12f   : > { %878 = shalt.err (!%p875_p11)
}
 0x130   : > { %s879_s11 = scalar_lea.hbm %s1240_s7, 16  ;;  %s883_s23 = scalar_lea.hbm %s1335_s3, 64 }
 0x131   : > { %p880_p3 = scmp.ne.s32.totalorder %s1240_s7, %s879_s11  ;;  %p884_p8 = scmp.lt.s32.totalorder %s1240_s7, %s1335_s3 }
 0x132   : > { %p885_p0 = scmp.lt.s32.totalorder %s883_s23, %s879_s11 }
 0x133   : > { %p881_p13 = pnand %p880_p3, %p1095_p9 }
 0x134   : > { %p886_p2 = por %p885_p0, %p884_p8 }
 0x135   : > { %p882_p1 = pneg %p881_p13 }
 0x137   : > { %p887_p4 = pnand %p886_p2, %p882_p1 }
 0x139   : > { %890 = shalt.err (!%p887_p4)
}
 0x13a   : > { %714 = dma.vmem_to_hbm [thread:$0]  (%p1095_p9), %s492_s10, 16, %s1240_s7, %s1211_s20   ;;  %v403_v35 = vsub.s32 0, %v402_v34 }
 0x13b   : > { %s646_s27 = sshll.u32 %s979_s16, 4  ;;  %s213_s25 = scalar_lea.vmem [#allocation5], %s641_s5  ;;  %v810_v37 = vpop.eup %809 }
 0x13c   : > { %v404_v36 = vrot.slane %v1197_v19, %v403_v35  ;;  %s455_s12 = sadd.s32 %s975_s15, %s646_s27  ;;  %s458_s30 = sshll.u32 %s213_s25, 4  ;;  %v416_v42 = vrot.slane %v810_v37, %v403_v35  ;;  %s1272_s30 = int_to_ptr.vmem [resolvable:$true] %s458_s30 }
 0x13d   : > { %s647_s8 = sshll.u32 %s455_s12, 7  ;;  %s436_s20 = scalar_lea.sflag [#allocation4], %s1130_s26 }
 0x13e   : > { %v405_v38 = vsub.f32 %v1181_v14, %v404_v36  ;;  %v406_v39 = vsub.f32 %v1175_v12, %v404_v36  ;;  %v407_v40 = vsub.f32 %v1169_v10, %v404_v36  ;;  %v408_v41 = vsub.f32 %v1163_v8, %v404_v36  ;;  %s1277_s5 = scalar_lea.hbm %s1333_s1, %s647_s8  ;;  %s891_s10 = scalar_lea.vmem %s1272_s30, 1024 }
 0x13f   : > { %v409_v43 = vsub.f32 %v1157_v6, %v404_v36  ;;  %v410_v44 = vsub.f32 %v1149_v3, %v404_v36  ;;  %v411_v45 = vsub.f32 %v1146_v2, %v404_v36  ;;  %v412_v46 = vsub.f32 %v1143_v1, %v404_v36  ;;  %p892_p5 = scmp.ne.s32.totalorder %s1272_s30, %s891_s10  ;;  %s1002_s7 = smov [#allocation5]  }
 0x140   : > { %v417_v47 = vmul.f32 %v416_v42, %v405_v38  ;;  %v418_v48 = vmul.f32 %v416_v42, %v406_v39  ;;  %v419_v49 = vmul.f32 %v416_v42, %v407_v40  ;;  %v420_v50 = vmul.f32 %v416_v42, %v408_v41  ;;  %s895_s11 = sshll.u32 %s1002_s7, 4  ;;  %s896_s11 = int_to_ptr.vmem [resolvable:$false] %s895_s11 }
 0x141   : > { %v421_v51 = vmul.f32 %v416_v42, %v409_v43  ;;  %v422_v52 = vmul.f32 %v416_v42, %v410_v44  ;;  %v423_v53 = vmul.f32 %v416_v42, %v411_v45  ;;  %v424_v54 = vmul.f32 %v416_v42, %v412_v46  ;;  %p893_p6 = pnand %p892_p5, %p1095_p9  ;;  %s897_s29 = scalar_lea.vmem %s896_s11, 2048 }
 0x142   : > { %425 = vst [vmem:[%s213_s25] sm:$0xff] %v417_v47  ;;  %426 = vst [vmem:[%s213_s25 + $0x8] sm:$0xff] %v418_v48  ;;  %p898_p10 = scmp.lt.s32.totalorder %s1272_s30, %s896_s11  ;;  %p899_p11 = scmp.lt.s32.totalorder %s897_s29, %s891_s10 }
 0x143   : > { %427 = vst [vmem:[%s213_s25 + $0x10] sm:$0xff] %v419_v49  ;;  %428 = vst [vmem:[%s213_s25 + $0x18] sm:$0xff] %v420_v50  ;;  %p894_p7 = pneg %p893_p6 }
 0x144   : > { %429 = vst [vmem:[%s213_s25 + $0x20] sm:$0xff] %v421_v51  ;;  %430 = vst [vmem:[%s213_s25 + $0x28] sm:$0xff] %v422_v52  ;;  %p900_p3 = por %p899_p11, %p898_p10 }
 0x145   : > { %431 = vst [vmem:[%s213_s25 + $0x30] sm:$0xff] %v423_v53  ;;  %432 = vst [vmem:[%s213_s25 + $0x38] sm:$0xff] %v424_v54 }
 0x146   : > { %p901_p13 = pnand %p900_p3, %p894_p7 }
 0x148   : > { %904 = shalt.err (!%p901_p13)
}
 0x149   : > { %s905_s9 = scalar_lea.hbm %s1277_s5, 1024  ;;  %s909_s24 = scalar_lea.hbm %s1333_s1, 4096 }
 0x14a   : > { %p906_p1 = scmp.ne.s32.totalorder %s1277_s5, %s905_s9  ;;  %p910_p2 = scmp.lt.s32.totalorder %s1277_s5, %s1333_s1 }
 0x14b   : > { %p911_p4 = scmp.lt.s32.totalorder %s909_s24, %s905_s9 }
 0x14c   : > { %p907_p8 = pnand %p906_p1, %p1095_p9 }
 0x14d   : > { %p912_p5 = por %p911_p4, %p910_p2 }
 0x14e   : > { %p908_p0 = pneg %p907_p8 }
 0x150   : > { %p913_p6 = pnand %p912_p5, %p908_p0 }
 0x152   : > { %916 = shalt.err (!%p913_p6)
}
 0x153   : > { %s1003_s25 = smov 128   ;;  %s1004_s8 = smov 256  }
 0x154   : > { %s1005_s15 = smov 8  }
 0x155   : > { %712 = dma.vmem_to_hbm [thread:$0]  (%p1095_p9), %s1272_s30, 1024, %s1277_s5, %s436_s20, %s1003_s25, %s1004_s8, %s1005_s15  }
 0x156 PF: > { %s1347_s16 = sld [smem:[#allocation12_spill]]  ;;  %p733_p7 = scmp.ge.s32.totalorder %s991_s19, 2 }
 0x158   : > { %p723_p10 = pnand %p733_p7, %p1103_p12 }
 0x15a   : > { %p724_p11 = pneg %p723_p10 }
 0x15c   : > { %s503_s10 = sand.u32 1, %s1347_s16  }
 0x15d   : > { %s504_s7 = scalar_lea.sflag [#allocation4], %s503_s10 }
 0x15e   : > { %954 = dma.done.wait (%p724_p11), %s504_s7, 1024  }
 0x15f   : > { %956 = vsyncadd (%p724_p11), %s504_s7, 4294966272  ;;  %s512_s11 = sand.u32 1, %s634_s21  }
 0x160   : > { %s513_s29 = scalar_lea.sflag [#allocation7], %s512_s11 }
 0x161   : > { %958 = dma.done.wait (%p724_p11), %s513_s29, 32  }
 0x162   : > { %960 = vsyncadd (%p724_p11), %s513_s29, 4294967264  ;;  %s23_s19 = sadd.s32 1, %s991_s19   ;;  %s1348_s28 = sld [smem:[#allocation13_spill]] }
 0x163   : > { %p20_p9 = scmp.ge.s32.totalorder %s23_s19, 6   ;;  %s1349_s4 = sld [smem:[#allocation14_spill]] }
 0x164   : > { %s1350_s12 = smov %s967_s13  ;;  %s1351_s13 = smov %s971_s14 }
 0x165   : > { %s1352_s14 = smov %s1110_s6  ;;  %s1353_s15 = smov %s983_s17 }
 0x166   : > { %s1354_s16 = smov %s987_s18  ;;  %22 = sbr.rel (!%p20_p9) target bundleno = 9 (0x9), region = 101 }
 0x168   : > { %s1355_s17 = smov %s1348_s28 }
 0x169   : > { %s1356_s18 = smov %s1349_s4 }
 0x16b   :  { %525 = vsyncpa [#allocation3], 1 }
 0x16c   :  { %527 = vsyncpa [#allocation3 + $0x1], 1 }
 0x16d   :  { %528 = vsyncpa [#allocation4], 1 }
 0x16e   :  { %530 = vsyncpa [#allocation4 + $0x1], 1 }
 0x16f   :  { %531 = vsyncpa [#allocation7], 1 }
 0x170   :  { %533 = vsyncpa [#allocation7 + $0x1], 1 }

</bundles_post_ra>
